<compile_context>
chip_gen: v5e
topology: v5e:2x2
jax: 0.10.0
libtpu: 0.0.40
codegen_flags: <defaults>
</compile_context>

<pallas_src>
import functools

import jax
import jax.numpy as jnp
from jax import lax
from jax.experimental import pallas as pl
from jax.experimental.pallas import tpu as pltpu


def _round_up(x, m):
    return ((x + m - 1) // m) * m


# ----------------------------------------------------------------------------
# Kernel 1: node embedding lookup (one-hot @ table on the MXU), row-tiled.
# ----------------------------------------------------------------------------
def node_embedding_kernel(z_ref, table_ref, out_ref):
    tn = z_ref.shape[0]
    vpad = table_ref.shape[0]                              # 128 (MXU-aligned K)
    z = z_ref[...]                                         # (TN, 1) int32
    ids = lax.broadcasted_iota(jnp.int32, (tn, vpad), 1)
    onehot = (z == ids).astype(jnp.float32)                # (TN, 128)
    out_ref[...] = jnp.dot(onehot, table_ref[...],
                           preferred_element_type=jnp.float32)


# ----------------------------------------------------------------------------
# Kernel 2: all-pairs edge construction on lane-dense (TI, TJ) planes.
#   pi_ref : (TI, 3)  row-side displaced positions
#   pj_ref : (3, TJ)  column-side displaced positions
#   bi_ref : (TI, 1)  row-side graph ids   (pad rows = -1)
#   bj_ref : (1, TJ)  column-side graph ids (pad cols = -2)
#   dist_ref, inv_ref : (TI, TJ)
#   dir_ref : (3, TI, TJ)  unit direction planes (x, y, z)
# ----------------------------------------------------------------------------
def edge_kernel(pi_ref, pj_ref, bi_ref, bj_ref,
                dist_ref, inv_ref, dir_ref, *, cutoff, eps):
    ti, tj = dist_ref.shape

    xi = pi_ref[:, 0:1]; yi = pi_ref[:, 1:2]; zi = pi_ref[:, 2:3]   # (TI, 1)
    xj = pj_ref[0:1, :]; yj = pj_ref[1:2, :]; zj = pj_ref[2:3, :]   # (1, TJ)

    dx = xi - xj                                           # (TI, TJ)
    dy = yi - yj
    dz = zi - zj
    d2 = dx * dx + dy * dy + dz * dz                       # 3 VPU FMAs, no XLU

    same = bi_ref[...] == bj_ref[...]                      # (TI, TJ)
    i0 = pl.program_id(0) * ti
    j0 = pl.program_id(1) * tj
    ri = i0 + lax.broadcasted_iota(jnp.int32, (ti, tj), 0)
    ci = j0 + lax.broadcasted_iota(jnp.int32, (ti, tj), 1)
    not_self = ri != ci

    # NOTE: strict d < cutoff kept to match the original kernel's convention.
    valid = jnp.logical_and(jnp.logical_and(same, not_self),
                            jnp.logical_and(d2 > eps, d2 < cutoff * cutoff))

    inv = jnp.where(valid, lax.rsqrt(jnp.maximum(d2, eps)), 0.0)   # single EUP op
    dist_ref[...] = d2 * inv                               # sqrt(d2) where valid, else 0
    inv_ref[...] = inv
    dir_ref[0, :, :] = dx * inv
    dir_ref[1, :, :] = dy * inv
    dir_ref[2, :, :] = dz * inv


# ----------------------------------------------------------------------------
# Wrapper: full EmbeddingNet forward
# ----------------------------------------------------------------------------
def embedding_net_forward(emb_table, z, pos, cell, batch, *, cutoff, n_basis):
    N = z.shape[0]
    V, F = emb_table.shape
    dtype = pos.dtype

    # ---- node embedding (Pallas kernel 1) ----
    Vp = _round_up(V, 128)                                 # 119 -> 128 (zero pad rows)
    table_p = jnp.zeros((Vp, F), jnp.float32).at[:V].set(emb_table.astype(jnp.float32))
    Nn = _round_up(N, 8)
    TN = min(256, Nn)
    Nn = _round_up(Nn, TN)
    z_col = jnp.zeros((Nn, 1), jnp.int32).at[:N, 0].set(z.astype(jnp.int32))

    atom_node = pl.pallas_call(
        node_embedding_kernel,
        out_shape=jax.ShapeDtypeStruct((Nn, F), jnp.float32),
        grid=(Nn // TN,),
        in_specs=[pl.BlockSpec((TN, 1), lambda i: (i, 0)),
                  pl.BlockSpec((Vp, F), lambda i: (0, 0))],   # table stays resident
        out_specs=pl.BlockSpec((TN, F), lambda i: (i, 0)),
        compiler_params=pltpu.CompilerParams(
            dimension_semantics=("parallel",)),
    )(z_col, table_p)[:N].astype(emb_table.dtype)

    # ---- force_node / displacement bookkeeping (matches torch reference) ----
    force_node = jnp.zeros((N, 3, F), dtype=dtype)
    displacement = jnp.zeros_like(cell)
    displacement = (displacement.at[:, 0, 0].set(1.0)
                                .at[:, 1, 1].set(1.0)
                                .at[:, 2, 2].set(1.0))
    sym = (displacement + jnp.swapaxes(displacement, -1, -2)) / 2.0   # (B, 3, 3)
    cell_displaced = jnp.matmul(cell, sym)   # computed for parity with torch
    del cell_displaced                       # TODO(synk): periodic images not applied.

    # pos_displaced = bmm(pos[:,None,:], sym[batch]) — tiny (N,3) contraction,
    # done in plain XLA glue (a separate pallas_call costs more than the compute).
    pos_displaced = jnp.einsum('ni,nij->nj', pos, sym[batch]).astype(dtype)

    # ---- dense all-pairs edges (Pallas kernel 2) ----
    if N <= 256:
        Np = _round_up(N, 8)
        TI = TJ = Np                                       # single tile, full-extent
    else:
        TI, TJ = 256, 512                                  # ~5 MiB double-buffered
        Np = _round_up(N, 512)

    pos_i = jnp.zeros((Np, 3), dtype).at[:N].set(pos_displaced)        # row side
    pos_j = jnp.transpose(pos_i)                                        # (3, Np)
    batch_i = jnp.full((Np, 1), -1, jnp.int32).at[:N, 0].set(batch.astype(jnp.int32))
    batch_j = jnp.full((1, Np), -2, jnp.int32).at[0, :N].set(batch.astype(jnp.int32))

    dist_p, inv_p, dir_p = pl.pallas_call(
        functools.partial(edge_kernel, cutoff=float(cutoff), eps=1e-12),
        out_shape=(jax.ShapeDtypeStruct((Np, Np), jnp.float32),
                   jax.ShapeDtypeStruct((Np, Np), jnp.float32),
                   jax.ShapeDtypeStruct((3, Np, Np), jnp.float32)),
        grid=(Np // TI, Np // TJ),
        in_specs=[pl.BlockSpec((TI, 3), lambda i, j: (i, 0)),
                  pl.BlockSpec((3, TJ), lambda i, j: (0, j)),
                  pl.BlockSpec((TI, 1), lambda i, j: (i, 0)),
                  pl.BlockSpec((1, TJ), lambda i, j: (0, j))],
        out_specs=(pl.BlockSpec((TI, TJ), lambda i, j: (i, j)),
                   pl.BlockSpec((TI, TJ), lambda i, j: (i, j)),
                   pl.BlockSpec((3, TI, TJ), lambda i, j: (0, i, j))),
        compiler_params=pltpu.CompilerParams(
            dimension_semantics=("parallel", "parallel"),
            vmem_limit_bytes=32 * 1024 * 1024),
    )(pos_i, pos_j, batch_i, batch_j)

    dist = dist_p[:N, :N]                                  # (N, N) 0 at non-edges
    inv = inv_p[:N, :N]                                    # (N, N) 0 at non-edges
    dir_nn = dir_p[:, :N, :N]                              # (3, N, N)
    mask = dist > 0.0                                      # valid edges have d > eps

    # ---- radial Bessel expansion of distances (glue; see TODO at top) ----
    freqs = jnp.arange(1, n_basis + 1, dtype=dtype)        # (n_basis,)
    rbf = (jnp.sqrt(2.0 / cutoff)
           * jnp.sin(freqs * jnp.pi * dist[:, :, None] / cutoff)
           * inv[:, :, None])                              # (N, N, n_basis), 0 at non-edges

    # ---- static dense edge list (invalid pairs -> -1 / zeros) ----
    ii = jnp.repeat(jnp.arange(N, dtype=jnp.int32), N)
    jj = jnp.tile(jnp.arange(N, dtype=jnp.int32), N)
    mflat = mask.reshape(-1)
    edge_index = jnp.stack([jnp.where(mflat, ii, -1),
                            jnp.where(mflat, jj, -1)], axis=0)          # (2, N*N)
    dist_edge = rbf.reshape(N * N, n_basis)
    dir_edge = jnp.transpose(dir_nn, (1, 2, 0)).reshape(N * N, 3)

    return atom_node, force_node, dir_edge, dist_edge, edge_index, displacement


if __name__ == "__main__":
    key = jax.random.PRNGKey(0)
    cutoff, n_features, n_basis = 5.0, 32, 8
    N, B, V = 8, 2, 118 + 1

    k1, k2, k3 = jax.random.split(key, 3)
    # deterministic parameter init; row 0 zeroed (padding_idx=0)
    emb_table = jax.random.normal(k1, (V, n_features), dtype=jnp.float32)
    emb_table = emb_table.at[0].set(0.0)

    z = jax.random.randint(k2, (N,), 1, V, dtype=jnp.int32)
    pos = jax.random.uniform(k3, (N, 3), dtype=jnp.float32) * 4.0
    cell = jnp.tile((10.0 * jnp.eye(3, dtype=jnp.float32))[None], (B, 1, 1))
    batch = jnp.array([0, 0, 0, 0, 1, 1, 1, 1], dtype=jnp.int32)

    outs = embedding_net_forward(emb_table, z, pos, cell, batch,
                                 cutoff=cutoff, n_basis=n_basis)
    outs = jax.block_until_ready(outs)
    print("KERNEL_OK")
</pallas_src>

<mosaic_0001>
module attributes {stable_mosaic.version = 11 : i64} {
  func.func @node_embedding_kernel(%arg0: i32, %arg1: memref<8x1xi32, #tpu.memory_space<vmem>>, %arg2: memref<128x32xf32, #tpu.memory_space<vmem>>, %arg3: memref<8x32xf32, #tpu.memory_space<vmem>>) attributes {dimension_semantics = [#tpu.dimension_semantics<parallel>], iteration_bounds = array<i64: 1>, scalar_prefetch = 0 : i64, scratch_operands = 0 : i64, tpu.core_type = #tpu.core_type<tc>, window_params = [{transform_indices = @transform_0, window_bounds = array<i64: 8, 1>}, {pipeline_mode = #tpu.pipeline_mode<synchronous>, transform_indices = @transform_1, window_bounds = array<i64: 128, 32>}, {transform_indices = @transform_2, window_bounds = array<i64: 8, 32>}]} {
    %c0 = arith.constant 0 : index
    %c0_0 = arith.constant 0 : index
    %0 = vector.load %arg1[%c0, %c0_0] : memref<8x1xi32, #tpu.memory_space<vmem>>, vector<8x1xi32>
    %1 = tpu.iota {dimensions = array<i32: 1>} : vector<8x128xi32>
    %2 = vector.broadcast %0 : vector<8x1xi32> to vector<8x128xi32>
    %3 = arith.cmpi eq, %2, %1 : vector<8x128xi32>
    %4 = arith.extui %3 : vector<8x128xi1> to vector<8x128xi32>
    %5 = arith.sitofp %4 : vector<8x128xi32> to vector<8x128xf32>
    %c0_1 = arith.constant 0 : index
    %c0_2 = arith.constant 0 : index
    %6 = vector.load %arg2[%c0_1, %c0_2] : memref<128x32xf32, #tpu.memory_space<vmem>>, vector<128x32xf32>
    %cst = arith.constant dense<0.000000e+00> : vector<8x32xf32>
    %7 = tpu.matmul %5, %6, %cst {dimension_numbers = #tpu.dot_dimension_numbers<[1], [0], [0], [1], [0, 0, 1, 1], [], []>} : vector<8x128xf32>, vector<128x32xf32>, vector<8x32xf32> -> vector<8x32xf32>
    %c0_3 = arith.constant 0 : index
    %c0_4 = arith.constant 0 : index
    %8 = vector.load %arg3[%c0_3, %c0_4] : memref<8x32xf32, #tpu.memory_space<vmem>>, vector<8x32xf32>
    tpu.vector_store %arg3[%c0_3, %c0_4], %7 {strides = array<i32>} : memref<8x32xf32, #tpu.memory_space<vmem>>, vector<8x32xf32>,
    return
  }
  func.func @transform_0(%arg0: i32) -> (i32, i32) {
    %c0_i32 = arith.constant 0 : i32
    %c0_i32_0 = arith.constant 0 : i32
    return %arg0, %c0_i32 : i32, i32
  }
  func.func @transform_1(%arg0: i32) -> (i32, i32) {
    %c0_i32 = arith.constant 0 : i32
    %c0_i32_0 = arith.constant 0 : i32
    %c0_i32_1 = arith.constant 0 : i32
    return %c0_i32, %c0_i32_0 : i32, i32
  }
  func.func @transform_2(%arg0: i32) -> (i32, i32) {
    %c0_i32 = arith.constant 0 : i32
    %c0_i32_0 = arith.constant 0 : i32
    return %arg0, %c0_i32 : i32, i32
  }
}

</mosaic_0001>

<bundles_post_ra>
// kernel: tpu_custom_call.1
= control target key start
LH: loop header
LB: loop body
LE: loop exit
PB: predicated region body
PF: predicated region fallthrough
CT: control target
= control target key end

     0   :  { %v107_v3 = vmov 0   ;;  %s179_s0 = inlined_call_operand.vmem [shape: s32[8,1], index: 0, kind: input, shape index: {}]   ;;  %s180_s1 = inlined_call_operand.vmem [shape: f32[128,32], index: 1, kind: input, shape index: {}]   ;;  %s181_s2 = inlined_call_operand.hbm [shape: f32[8,32], index: 2, kind: output, shape index: {}]  }
   0x1   :  { %v12_v0 = vld [vmem:[%s179_s0] sm:$0xff]  ;;  %v36_v1 = vld [vmem:[%s180_s1 + $0x78] sm:$0xff]  ;;  %v35_v2 = vld [vmem:[%s180_s1 + $0x70] sm:$0xff]  ;;  %80 = vset.pattern.permute.xlu0 %v107_v3 }
   0x2   :  { %37 = vmatpush.msra.mxu0 %v36_v1  ;;  %16 = vperm.xlu0 %80, %v12_v0   ;;  %v34_v4 = vld [vmem:[%s180_s1 + $0x68] sm:$0xff]  ;;  %v33_v5 = vld [vmem:[%s180_s1 + $0x60] sm:$0xff] }
   0x4   :  { %38 = vmatpush.msra.mxu0 %v35_v2 }
   0x6   :  { %39 = vmatpush.msra.mxu0 %v34_v4 }
   0x7   :  { %7 = vsyncpa [#allocation3], 0  ;;  %v32_v6 = vld [vmem:[%s180_s1 + $0x58] sm:$0xff]  ;;  %v31_v7 = vld [vmem:[%s180_s1 + $0x50] sm:$0xff]  ;;  %v13_v18 = vlaneseq  ;;  %v108_v21 = vmov 1.0   ;;  %s109_s14 = smov [#allocation2]  }
   0x8   :  { %40 = vmatpush.msra.mxu0 %v33_v5  ;;  %v30_v8 = vld [vmem:[%s180_s1 + $0x48] sm:$0xff]  ;;  %v29_v9 = vld [vmem:[%s180_s1 + $0x40] sm:$0xff]  ;;  %v28_v10 = vld [vmem:[%s180_s1 + $0x38] sm:$0xff]  ;;  %s64_s15 = sshll.u32 %s109_s14, 4  ;;  %s66_s18 = sshll.u32 %s181_s2, 4  ;;  %vm57_vm1 = vcmask 261120   ;;  %s65_s15 = int_to_ptr.vmem [resolvable:$true] %s64_s15  ;;  %s67_s18 = int_to_ptr.hbm [resolvable:$true] %s66_s18 }
   0x9   :  { %v27_v11 = vld [vmem:[%s180_s1 + $0x30] sm:$0xff]  ;;  %v26_v12 = vld [vmem:[%s180_s1 + $0x28] sm:$0xff]  ;;  %v25_v13 = vld [vmem:[%s180_s1 + $0x20] sm:$0xff]  ;;  %v14_v19 = vand.u32 127, %v13_v18 }
   0xa   :  { %41 = vmatpush.msra.mxu0 %v32_v6  ;;  %v24_v14 = vld [vmem:[%s180_s1 + $0x18] sm:$0xff]  ;;  %v23_v15 = vld [vmem:[%s180_s1 + $0x10] sm:$0xff]  ;;  %v22_v16 = vld [vmem:[%s180_s1 + $0x8] sm:$0xff] }
   0xb   :  { %v21_v17 = vld [vmem:[%s180_s1] sm:$0xff] }
   0xc   :  { %42 = vmatpush.msra.mxu0 %v31_v7 }
   0xe   :  { %43 = vmatpush.msra.mxu0 %v30_v8 }
  0x10   :  { %44 = vmatpush.msra.mxu0 %v29_v9 }
  0x12   :  { %45 = vmatpush.msra.mxu0 %v28_v10 }
  0x14   :  { %46 = vmatpush.msra.mxu0 %v27_v11 }
  0x16   :  { %47 = vmatpush.msra.mxu0 %v26_v12 }
  0x18   :  { %48 = vmatpush.msra.mxu0 %v25_v13 }
  0x1a   :  { %49 = vmatpush.msra.mxu0 %v24_v14 }
  0x1c   :  { %50 = vmatpush.msra.mxu0 %v23_v15 }
  0x1e   :  { %51 = vmatpush.msra.mxu0 %v22_v16 }
  0x20   :  { %52 = vmatpush.msra.mxu0 %v21_v17 }
  0x74   :  { %v17_v20 = vpop.permute.xlu0 %16 }
  0x75   :  { %vm18_vm0 = vcmp.eq.s32.totalorder %v17_v20, %v14_v19 }
  0x76   :  { %76 = vmatmul.msk.f32.vlgmr.msra.gmra.mxu0 %vm18_vm0, %v108_v21 }
  0xf3   :  { %v54_v22 = vpop.f32.mrf.mxu0 }
  0xf4   :  { %58 = vst.msk [vmem:[#allocation2] sm:$0xff] %vm57_vm1, %v54_v22 }
  0xf5   :  { %69 = dma.vmem_to_hbm [thread:$0]  %s65_s15, 128, %s67_s18, [#allocation3]  }
  0xf6   :  { %105 = dma.done.wait [#allocation3], 128  }
  0xf7   :  { %106 = vsyncadd [#allocation3], 4294967168 }
  0xf8   :  { %74 = vsyncpa [#allocation3], 1 }

</bundles_post_ra>
